<compile_context>
chip_gen: v7x
topology: tpu7x:2x2x1
jax: 0.10.0
libtpu: 0.0.40
codegen_flags: <defaults>
</compile_context>

<pallas_src>
import functools

import jax
import jax.numpy as jnp
from jax.experimental import pallas as pl
from jax.experimental.pallas import tpu as pltpu


# ----------------------------------------------------------------------------
# Helpers
# ----------------------------------------------------------------------------
def _round_up(n, m):
    return ((n + m - 1) // m) * m


def _softplus(z):
    # Matches torch.nn.functional.softplus (beta=1, threshold=20).
    return jnp.where(z > 20.0, z, jnp.log1p(jnp.exp(jnp.minimum(z, 20.0))))


# ----------------------------------------------------------------------------
# Pallas kernel (non-global branch): softplus(relu(x @ W1 + b1) . w2 + b2)
# ----------------------------------------------------------------------------
def k_mlp_kernel(x_ref, w1_ref, b1_ref, w2_ref, b2_ref, o_ref):
    # x_ref:  (TB, IN)   f32 or bf16 (streamed tile of the batch)
    # w1_ref: (IN, HID)  f32/bf16, VMEM-resident (constant index_map)
    # b1_ref: (1, HID)   f32
    # w2_ref: (1, HID)   f32  (second layer weight as a row vector)
    # b2_ref: (1, 1)     f32, SMEM scalar
    # o_ref:  (1, TB)    f32, lane-dense output slab (batch on lane axis)

    # Layer 1 on the MXU, f32 accumulation.
    h = jnp.dot(x_ref[...], w1_ref[...],
                preferred_element_type=jnp.float32)          # (TB, HID) f32
    h = jnp.maximum(h + b1_ref[...], 0.0)                    # bias + ReLU (VPU)

    # Layer 2 (OUT=1): VPU multiply + lane reduce instead of an N=1 MXU matmul.
    z = jnp.sum(h * w2_ref[...], axis=-1) + b2_ref[0, 0]     # (TB,) f32

    # Lane-dense store: one (1, TB) unmasked slab instead of (TB, 1) masked vst.
    o_ref[...] = _softplus(z)[None, :].astype(o_ref.dtype)


# ----------------------------------------------------------------------------
# Wrappers
# ----------------------------------------------------------------------------
@functools.partial(jax.jit, static_argnames=("block_batch", "stream_bf16"))
def k_net_mlp(x, w1, b1, w2, b2, *, block_batch=1024, stream_bf16=False):
    """Non-global K_net branch.

    x:  (B, IN) float32
    w1: (IN, HID), b1: (1, HID)
    w2: (HID, 1),  b2: (1, 1)
    returns (B, 1) float32
    """
    B, IN = x.shape
    HID = w1.shape[1]

    # Batch tile: multiple of 128 so the lane-dense (1, TB) output block and
    # the (TB, IN) input block satisfy the (8, 128) tiling rules for both f32
    # and bf16 streaming.  Big tiles amortize the ~0.35 us/grid-step overhead.
    TB = min(block_batch, _round_up(B, 128))
    TB = _round_up(TB, 128)
    B_pad = _round_up(B, TB)

    x_p = x if B_pad == B else jnp.pad(x, ((0, B_pad - B), (0, 0)))

    if stream_bf16:
        # Halve HBM bytes for the streamed operand; accumulate in f32 on MXU.
        # Bias / ReLU / softplus epilogue stays f32 (required on v5e).
        x_p = x_p.astype(jnp.bfloat16)
        w1 = w1.astype(jnp.bfloat16)

    w2_row = w2.reshape(1, HID).astype(jnp.float32)      # (1, HID)
    b1 = b1.astype(jnp.float32)
    b2 = b2.reshape(1, 1).astype(jnp.float32)

    grid = (pl.cdiv(B_pad, TB),)

    out = pl.pallas_call(
        k_mlp_kernel,
        out_shape=jax.ShapeDtypeStruct((1, B_pad), jnp.float32),
        grid=grid,
        in_specs=[
            # x: tiled along the batch -> double-buffered DMA under compute.
            pl.BlockSpec((TB, IN), lambda i: (i, 0)),
            # Weights/biases: constant index_map -> loaded once, VMEM-resident.
            pl.BlockSpec((IN, HID), lambda i: (0, 0)),
            pl.BlockSpec((1, HID), lambda i: (0, 0)),
            pl.BlockSpec((1, HID), lambda i: (0, 0)),
            # b2 scalar lives in SMEM.
            pl.BlockSpec((1, 1), lambda i: (0, 0), memory_space=pltpu.SMEM),
        ],
        out_specs=pl.BlockSpec((1, TB), lambda i: (0, i)),
        compiler_params=pltpu.CompilerParams(
            # Batch tiles are independent: shard across the 2 TCs on v7x.
            dimension_semantics=("parallel",),
            # NOTE: at IN=16/HID=32 even TB=8192 is ~1 MiB/buffer; if IN/HID
            # are scaled up, re-derive TB against v7x's 64 MiB VMEM and set
            # vmem_limit_bytes explicitly here.
        ),
    )(x_p, w1, b1, w2_row, b2)

    # Back to the module's (B, 1) layout.
    return out[0, :B].reshape(B, 1)


def k_net_global(k_scalar, batch):
    """Global-Lipschitz branch: softplus(k).repeat(B).unsqueeze(1).

    Per perf review this is left to XLA: a pallas_call custom-call for a
    constant fill is pure launch overhead on every TPU generation.
    """
    k = jnp.asarray(k_scalar, jnp.float32)
    return jnp.full((batch, 1), _softplus(k), dtype=jnp.float32)


# ----------------------------------------------------------------------------
# Deterministic parameter init (mirrors the PyTorch mlp() init)
# ----------------------------------------------------------------------------
def init_k_net_params(key, sizes, k_init):
    """sizes = [in, hid, out]; hidden layer ReLU (kaiming_normal),
    output layer Softplus (xavier_normal), biases ~ U(-1/sqrt(fan_in), ...),
    last bias += k_init."""
    in_dim, hid_dim, out_dim = sizes
    k1, k2, k3, k4 = jax.random.split(key, 4)

    # Layer 1: kaiming_normal_(nonlinearity='relu'): std = sqrt(2 / fan_in)
    w1 = jax.random.normal(k1, (in_dim, hid_dim), jnp.float32) * jnp.sqrt(
        2.0 / in_dim)
    b1 = jax.random.uniform(k2, (1, hid_dim), jnp.float32,
                            -1.0 / jnp.sqrt(in_dim), 1.0 / jnp.sqrt(in_dim))

    # Layer 2: xavier_normal_: std = sqrt(2 / (fan_in + fan_out))
    w2 = jax.random.normal(k3, (hid_dim, out_dim), jnp.float32) * jnp.sqrt(
        2.0 / (hid_dim + out_dim))
    b2 = jax.random.uniform(k4, (1, out_dim), jnp.float32,
                            -1.0 / jnp.sqrt(hid_dim), 1.0 / jnp.sqrt(hid_dim))
    b2 = b2 + jnp.float32(k_init)   # self.k[-2].bias.data += k_init

    return w1, b1, w2, b2


# ----------------------------------------------------------------------------
# Main
# ----------------------------------------------------------------------------
if __name__ == "__main__":
    key = jax.random.PRNGKey(0)
    kx, kp, kb = jax.random.split(key, 3)

    # Small shapes implied by the module: obs-dim features -> hidden -> 1.
    B, IN, HID, OUT = 2, 16, 32, 1
    k_init = 1.0

    x = jax.random.normal(kx, (B, IN), jnp.float32)
    w1, b1, w2, b2 = init_k_net_params(kp, [IN, HID, OUT], k_init)

    def ref_fwd(xx):
        h = jnp.maximum(xx @ w1 + b1, 0.0)
        return jax.nn.softplus(h @ w2 + b2)

    # ---- non-global branch (MLP K-net), f32 streaming ----
    y_mlp = jax.block_until_ready(k_net_mlp(x, w1, b1, w2, b2))
    y_ref = ref_fwd(x)
    assert y_mlp.shape == (B, OUT)
    assert jnp.allclose(y_mlp, y_ref, atol=1e-5, rtol=1e-5)

    # ---- non-global branch, bf16-streamed x/W1 (perf-review item) ----
    y_bf16 = jax.block_until_ready(
        k_net_mlp(x, w1, b1, w2, b2, stream_bf16=True))
    assert jnp.allclose(y_bf16, y_ref, atol=5e-2, rtol=5e-2)

    # ---- larger batch exercising the multi-tile (grid > 1) pipelined path ----
    B_big = 4096
    x_big = jax.random.normal(kb, (B_big, IN), jnp.float32)
    y_big = jax.block_until_ready(
        k_net_mlp(x_big, w1, b1, w2, b2, block_batch=1024))
    assert y_big.shape == (B_big, OUT)
    assert jnp.allclose(y_big, ref_fwd(x_big), atol=1e-5, rtol=1e-5)

    # ---- global-Lipschitz branch (scalar k; plain JAX per perf review) ----
    y_glob = jax.block_until_ready(k_net_global(k_init, B))
    y_glob_ref = jnp.full((B, 1), jax.nn.softplus(jnp.float32(k_init)))
    assert y_glob.shape == (B, 1)
    assert jnp.allclose(y_glob, y_glob_ref, atol=1e-5, rtol=1e-5)

    print("KERNEL_OK")
</pallas_src>

<mosaic_0001>
module attributes {stable_mosaic.version = 11 : i64} {
  func.func @k_mlp_kernel(%arg0: i32, %arg1: memref<128x16xf32, #tpu.memory_space<vmem>>, %arg2: memref<16x32xf32, #tpu.memory_space<vmem>>, %arg3: memref<1x32xf32, #tpu.memory_space<vmem>>, %arg4: memref<1x32xf32, #tpu.memory_space<vmem>>, %arg5: memref<1x1xf32, #tpu.memory_space<smem>>, %arg6: memref<1x128xf32, #tpu.memory_space<vmem>>) attributes {dimension_semantics = [#tpu.dimension_semantics<parallel>], iteration_bounds = array<i64: 1>, scalar_prefetch = 0 : i64, scratch_operands = 0 : i64, tpu.core_type = #tpu.core_type<tc>, window_params = [{transform_indices = @transform_0, window_bounds = array<i64: 128, 16>}, {pipeline_mode = #tpu.pipeline_mode<synchronous>, transform_indices = @transform_1, window_bounds = array<i64: 16, 32>}, {pipeline_mode = #tpu.pipeline_mode<synchronous>, transform_indices = @transform_2, window_bounds = array<i64: 1, 32>}, {pipeline_mode = #tpu.pipeline_mode<synchronous>, transform_indices = @transform_3, window_bounds = array<i64: 1, 32>}, {transform_indices = @transform_4, window_bounds = array<i64: 1, 1>}, {transform_indices = @transform_5, window_bounds = array<i64: 1, 128>}]} {
    %c0 = arith.constant 0 : index
    %c0_0 = arith.constant 0 : index
    %0 = vector.load %arg1[%c0, %c0_0] : memref<128x16xf32, #tpu.memory_space<vmem>>, vector<128x16xf32>
    %c0_1 = arith.constant 0 : index
    %c0_2 = arith.constant 0 : index
    %1 = vector.load %arg2[%c0_1, %c0_2] : memref<16x32xf32, #tpu.memory_space<vmem>>, vector<16x32xf32>
    %cst = arith.constant dense<0.000000e+00> : vector<128x32xf32>
    %2 = tpu.matmul %0, %1, %cst {dimension_numbers = #tpu.dot_dimension_numbers<[1], [0], [0], [1], [0, 0, 1, 1], [], []>} : vector<128x16xf32>, vector<16x32xf32>, vector<128x32xf32> -> vector<128x32xf32>
    %c0_3 = arith.constant 0 : index
    %c0_4 = arith.constant 0 : index
    %3 = vector.load %arg3[%c0_3, %c0_4] : memref<1x32xf32, #tpu.memory_space<vmem>>, vector<1x32xf32>
    %4 = vector.broadcast %3 : vector<1x32xf32> to vector<128x32xf32>
    %5 = arith.addf %2, %4 : vector<128x32xf32>
    %cst_5 = arith.constant 0.000000e+00 : f32
    %6 = vector.broadcast %cst_5 : f32 to vector<128x32xf32>
    %7 = arith.maximumf %5, %6 : vector<128x32xf32>
    %c0_6 = arith.constant 0 : index
    %c0_7 = arith.constant 0 : index
    %8 = vector.load %arg4[%c0_6, %c0_7] : memref<1x32xf32, #tpu.memory_space<vmem>>, vector<1x32xf32>
    %9 = vector.broadcast %8 : vector<1x32xf32> to vector<128x32xf32>
    %10 = arith.mulf %7, %9 : vector<128x32xf32>
    %cst_8 = arith.constant dense<0.000000e+00> : vector<128xf32>
    %11 = vector.multi_reduction <add>, %10, %cst_8 [1] : vector<128x32xf32> to vector<128xf32>
    %c0_9 = arith.constant 0 : index
    %c0_10 = arith.constant 0 : index
    %12 = memref.load %arg5[%c0_9, %c0_10] : memref<1x1xf32, #tpu.memory_space<smem>>
    %13 = vector.broadcast %12 : f32 to vector<128xf32>
    %14 = arith.addf %11, %13 : vector<128xf32>
    %cst_11 = arith.constant 2.000000e+01 : f32
    %15 = vector.broadcast %cst_11 : f32 to vector<128xf32>
    %16 = arith.cmpf ogt, %14, %15 : vector<128xf32>
    %cst_12 = arith.constant 2.000000e+01 : f32
    %17 = vector.broadcast %cst_12 : f32 to vector<128xf32>
    %18 = arith.minimumf %14, %17 : vector<128xf32>
    %19 = math.exp %18 : vector<128xf32>
    %20 = math.log1p %19 : vector<128xf32>
    %21 = arith.select %16, %14, %20 : vector<128xi1>, vector<128xf32>
    %22 = vector.shape_cast %21 : vector<128xf32> to vector<1x128xf32>
    %c0_13 = arith.constant 0 : index
    %c0_14 = arith.constant 0 : index
    %23 = vector.load %arg6[%c0_13, %c0_14] : memref<1x128xf32, #tpu.memory_space<vmem>>, vector<1x128xf32>
    tpu.vector_store %arg6[%c0_13, %c0_14], %22 {strides = array<i32>} : memref<1x128xf32, #tpu.memory_space<vmem>>, vector<1x128xf32>,
    return
  }
  func.func @transform_0(%arg0: i32) -> (i32, i32) {
    %c0_i32 = arith.constant 0 : i32
    %c0_i32_0 = arith.constant 0 : i32
    return %arg0, %c0_i32 : i32, i32
  }
  func.func @transform_1(%arg0: i32) -> (i32, i32) {
    %c0_i32 = arith.constant 0 : i32
    %c0_i32_0 = arith.constant 0 : i32
    %c0_i32_1 = arith.constant 0 : i32
    return %c0_i32, %c0_i32_0 : i32, i32
  }
  func.func @transform_2(%arg0: i32) -> (i32, i32) {
    %c0_i32 = arith.constant 0 : i32
    %c0_i32_0 = arith.constant 0 : i32
    %c0_i32_1 = arith.constant 0 : i32
    return %c0_i32, %c0_i32_0 : i32, i32
  }
  func.func @transform_3(%arg0: i32) -> (i32, i32) {
    %c0_i32 = arith.constant 0 : i32
    %c0_i32_0 = arith.constant 0 : i32
    %c0_i32_1 = arith.constant 0 : i32
    return %c0_i32, %c0_i32_0 : i32, i32
  }
  func.func @transform_4(%arg0: i32) -> (i32, i32) {
    %c0_i32 = arith.constant 0 : i32
    %c0_i32_0 = arith.constant 0 : i32
    %c0_i32_1 = arith.constant 0 : i32
    return %c0_i32, %c0_i32_0 : i32, i32
  }
  func.func @transform_5(%arg0: i32) -> (i32, i32) {
    %c0_i32 = arith.constant 0 : i32
    %c0_i32_0 = arith.constant 0 : i32
    return %c0_i32, %arg0 : i32, i32
  }
}

</mosaic_0001>

<bundles_post_ra>
// kernel: k_net_mlp.1
= control target key start
LH: loop header
LB: loop body
LE: loop exit
PB: predicated region body
PF: predicated region fallthrough
CT: control target
= control target key end

     0   :  { %vm46_vm0 = vcmask 130048   ;;  %vm279_vm1 = vcmask 261120   ;;  %vm597_vm10 = vcmask 130112   ;;  %s1464_s1 = inlined_call_operand.vmem [shape: f32[16,32], index: 1, kind: input, shape index: {}]   ;;  %s1465_s0 = inlined_call_operand.vmem [shape: f32[128,16], index: 0, kind: input, shape index: {}]   ;;  %s1466_s2 = inlined_call_operand.vmem [shape: f32[1,32], index: 2, kind: input, shape index: {}]   ;;  %s1467_s3 = inlined_call_operand.vmem [shape: f32[1,32], index: 3, kind: input, shape index: {}]   ;;  %s1468_s4 = inlined_call_operand.<no memory space> [shape: f32[1,1], index: 4, kind: input, shape index: {}]   ;;  %s1469_s5 = inlined_call_operand.vmem [shape: f32[1,128], index: 5, kind: output, shape index: {}]  }
   0x1   :  { %v37_v0 = vld [vmem:[%s1464_s1] sm:$0xff]  ;;  %v38_v1 = vld [vmem:[%s1464_s1 + $0x8] sm:$0xff]  ;;  %v23_v7 = vld [vmem:[%s1465_s0 + $0x10] sm:$0xff] }
   0x2   :  { %v21_v2 = vld [vmem:[%s1465_s0] sm:$0xff]  ;;  %v767_v3 = vpack.c.bf16 %v38_v1, %v37_v0  ;;  %v22_v5 = vld [vmem:[%s1465_s0 + $0x8] sm:$0xff]  ;;  %v31_v8 = vld [vmem:[%s1465_s0 + $0x50] sm:$0xff] }
   0x3   :  { %743 = vmatprep.mubr.msk.f32.mxu0 %vm46_vm0, %v21_v2  ;;  %v29_v4 = vld [vmem:[%s1465_s0 + $0x40] sm:$0xff]  ;;  %v30_v6 = vld [vmem:[%s1465_s0 + $0x48] sm:$0xff]  ;;  %v24_v9 = vld [vmem:[%s1465_s0 + $0x18] sm:$0xff] }
   0x4   :  { %755 = vmatprep.mubr.msk.f32.mxu1 %vm46_vm0, %v29_v4  ;;  %768 = vmatprep.subr.bf16.mxu0 %v767_v3  ;;  %v32_v10 = vld [vmem:[%s1465_s0 + $0x58] sm:$0xff]  ;;  %v25_v11 = vld [vmem:[%s1465_s0 + $0x20] sm:$0xff]  ;;  %v26_v13 = vld [vmem:[%s1465_s0 + $0x28] sm:$0xff] }
   0x5   :  { %771 = vmatprep.subr.bf16.mxu1 %v767_v3  ;;  %770 = vmatpush3.bf16.msra.mxu0 %v767_v3  ;;  %v33_v12 = vld [vmem:[%s1465_s0 + $0x60] sm:$0xff]  ;;  %v34_v14 = vld [vmem:[%s1465_s0 + $0x68] sm:$0xff]  ;;  %v27_v15 = vld [vmem:[%s1465_s0 + $0x30] sm:$0xff] }
   0x6   :  { %772 = vmatpush3.bf16.msra.mxu1 %v767_v3  ;;  %v35_v16 = vld [vmem:[%s1465_s0 + $0x70] sm:$0xff]  ;;  %v28_v17 = vld [vmem:[%s1465_s0 + $0x38] sm:$0xff]  ;;  %v940_v19 = vld [vmem:[%s1466_s2] ss:$0 sm:$0xff] }
   0x7   :  { %v36_v18 = vld [vmem:[%s1465_s0 + $0x78] sm:$0xff]  ;;  %v949_v28 = vld [vmem:[%s1467_s3] ss:$0 sm:$0xff] }
   0x8   :  { %744 = vmatmul.mubr.msk.f32.vlgmr.msra.gmra.mrb[0].mxu0 %vm46_vm0, %v22_v5 }
   0x9   :  { %756 = vmatmul.mubr.msk.f32.vlgmr.msra.gmra.mrb[0].mxu1 %vm46_vm0, %v30_v6  ;;  %746 = vmatprep.mubr.msk.f32.mxu0 %vm46_vm0, %v23_v7 }
   0xa   :  { %758 = vmatprep.mubr.msk.f32.mxu1 %vm46_vm0, %v31_v8 }
   0xc   :  { %747 = vmatmul.mubr.msk.f32.gmra.mrb[2].mxu0 %vm46_vm0, %v24_v9 }
   0xd   :  { %759 = vmatmul.mubr.msk.f32.gmra.mrb[2].mxu1 %vm46_vm0, %v32_v10  ;;  %749 = vmatprep.mubr.msk.f32.mxu0 %vm46_vm0, %v25_v11 }
   0xe   :  { %761 = vmatprep.mubr.msk.f32.mxu1 %vm46_vm0, %v33_v12 }
  0x10   :  { %750 = vmatmul.mubr.msk.f32.gmra.mrb[4].mxu0 %vm46_vm0, %v26_v13 }
  0x11   :  { %762 = vmatmul.mubr.msk.f32.gmra.mrb[4].mxu1 %vm46_vm0, %v34_v14  ;;  %752 = vmatprep.mubr.msk.f32.mxu0 %vm46_vm0, %v27_v15 }
  0x12   :  { %764 = vmatprep.mubr.msk.f32.mxu1 %vm46_vm0, %v35_v16 }
  0x14   :  { %753 = vmatmul.mubr.msk.f32.gmra.mrb[6].mxu0 %vm46_vm0, %v28_v17 }
  0x15   :  { %765 = vmatmul.mubr.msk.f32.gmra.mrb[6].mxu1 %vm46_vm0, %v36_v18  ;;  %vm604_vm0 = vcmask 195712  }
  0xdb   :  { %v745_v20 = vpop.f32.mrb[0].mxu0 }
  0xdc   :  { %v757_v21 = vpop.f32.mrb[0].mxu1  ;;  %v167_v22 = vadd.f32 %v745_v20, %v940_v19  ;;  %v161_v24 = vpop.f32.mrb[1].mxu0 }
  0xdd   :  { %v207_v23 = vadd.f32 %v757_v21, %v940_v19  ;;  %v201_v25 = vpop.f32.mrb[1].mxu1  ;;  %v162_v26 = vadd.f32 %v940_v19, %v161_v24 }
  0xde   :  { %v202_v27 = vadd.f32 %v940_v19, %v201_v25  ;;  %v241_v29 = vmax.f32 %v167_v22, 0.0 }
  0xdf   :  { %v249_v30 = vmax.f32 %v207_v23, 0.0  ;;  %v240_v31 = vmax.f32 %v162_v26, 0.0  ;;  %v748_v32 = vpop.f32.mrb[2].mxu0 }
  0xe0   :  { %v760_v33 = vpop.f32.mrb[2].mxu1  ;;  %v177_v34 = vadd.f32 %v748_v32, %v940_v19  ;;  %v171_v35 = vpop.f32.mrb[3].mxu0  ;;  %v264_v38 = vmul.f32 %v949_v28, %v241_v29  ;;  %v248_v40 = vmax.f32 %v202_v27, 0.0 }
  0xe1   :  { %v272_v36 = vmul.f32 %v949_v28, %v249_v30  ;;  %v217_v37 = vadd.f32 %v760_v33, %v940_v19  ;;  %v211_v39 = vpop.f32.mrb[3].mxu1  ;;  %v172_v41 = vadd.f32 %v940_v19, %v171_v35  ;;  %v263_v43 = vmul.f32 %v949_v28, %v240_v31 }
  0xe2   :  { %v212_v42 = vadd.f32 %v940_v19, %v211_v39  ;;  %v243_v44 = vmax.f32 %v177_v34, 0.0  ;;  %v283_v47 = vsel %vm279_vm1, %v264_v38, 0.0  ;;  %v271_v56 = vmul.f32 %v949_v28, %v248_v40 }
  0xe3   :  { %v307_v45 = vsel %vm279_vm1, %v272_v36, 0.0  ;;  %v251_v46 = vmax.f32 %v217_v37, 0.0  ;;  %284 = vadd.xlane.f32.xlu0 %v283_v47  ;;  %v751_v48 = vpop.f32.mrb[4].mxu0  ;;  %v242_v57 = vmax.f32 %v172_v41, 0.0  ;;  %v280_v60 = vsel %vm279_vm1, %v263_v43, 0.0 }
  0xe4   :  { %308 = vadd.xlane.f32.xlu1 %v307_v45  ;;  %v763_v49 = vpop.f32.mrb[4].mxu1  ;;  %v266_v50 = vmul.f32 %v949_v28, %v243_v44  ;;  %v187_v51 = vadd.f32 %v751_v48, %v940_v19  ;;  %v181_v52 = vpop.f32.mrb[5].mxu0  ;;  %v250_v58 = vmax.f32 %v212_v42, 0.0  ;;  %v304_v6 = vsel %vm279_vm1, %v271_v56, 0.0 }
  0xe5   :  { %v274_v53 = vmul.f32 %v949_v28, %v251_v46  ;;  %v221_v54 = vpop.f32.mrb[5].mxu1  ;;  %v182_v55 = vadd.f32 %v940_v19, %v181_v52  ;;  %v265_v7 = vmul.f32 %v949_v28, %v242_v57  ;;  %v227_v9 = vadd.f32 %v763_v49, %v940_v19 }
  0xe6   :  { %v289_v59 = vsel %vm279_vm1, %v266_v50, 0.0  ;;  %v245_v63 = vmax.f32 %v187_v51, 0.0  ;;  %v273_v8 = vmul.f32 %v949_v28, %v250_v58  ;;  %v222_v10 = vadd.f32 %v940_v19, %v221_v54 }
  0xe7   :  { %281 = vadd.xlane.f32.xlu0 %v280_v60  ;;  %v754_v61 = vpop.f32.mrb[6].mxu0  ;;  %v244_v0 = vmax.f32 %v182_v55, 0.0  ;;  %v313_v1 = vsel %vm279_vm1, %v274_v53, 0.0  ;;  %v286_v15 = vsel %vm279_vm1, %v265_v7, 0.0  ;;  %v253_v17 = vmax.f32 %v227_v9, 0.0 }
  0xe8   :  { %290 = vadd.xlane.f32.xlu1 %v289_v59  ;;  %v766_v62 = vpop.f32.mrb[6].mxu1  ;;  %v197_v2 = vadd.f32 %v754_v61, %v940_v19  ;;  %v191_v3 = vpop.f32.mrb[7].mxu0  ;;  %v268_v13 = vmul.f32 %v949_v28, %v245_v63  ;;  %v310_v16 = vsel %vm279_vm1, %v273_v8, 0.0  ;;  %v252_v18 = vmax.f32 %v222_v10, 0.0 }
  0xe9   :  { %v231_v4 = vpop.f32.mrb[7].mxu1  ;;  %v192_v5 = vadd.f32 %v940_v19, %v191_v3  ;;  %v267_v14 = vmul.f32 %v949_v28, %v244_v0  ;;  %v237_v20 = vadd.f32 %v766_v62, %v940_v19  ;;  %v276_v26 = vmul.f32 %v949_v28, %v253_v17 }
  0xea   :  { %v247_v11 = vmax.f32 %v197_v2, 0.0  ;;  %v232_v21 = vadd.f32 %v940_v19, %v231_v4  ;;  %v295_v22 = vsel %vm279_vm1, %v268_v13, 0.0  ;;  %v275_v27 = vmul.f32 %v949_v28, %v252_v18 }
  0xeb   :  { %305 = vadd.xlane.f32.xlu0 %v304_v6  ;;  %v246_v12 = vmax.f32 %v192_v5, 0.0  ;;  %v292_v23 = vsel %vm279_vm1, %v267_v14, 0.0  ;;  %v255_v29 = vmax.f32 %v237_v20, 0.0  ;;  %v319_v32 = vsel %vm279_vm1, %v276_v26, 0.0 }
  0xec   :  { %314 = vadd.xlane.f32.xlu1 %v313_v1  ;;  %v270_v24 = vmul.f32 %v949_v28, %v247_v11  ;;  %v254_v30 = vmax.f32 %v232_v21, 0.0  ;;  %v316_v33 = vsel %vm279_vm1, %v275_v27, 0.0  ;;  %v998_v38 = vstv %s1468_s4 }
  0xed   :  { %v269_v25 = vmul.f32 %v949_v28, %v246_v12  ;;  %v278_v34 = vmul.f32 %v949_v28, %v255_v29  ;;  %v586_v55 = vlaneseq }
  0xee   :  { %v301_v31 = vsel %vm279_vm1, %v270_v24, 0.0  ;;  %v277_v35 = vmul.f32 %v949_v28, %v254_v30 }
  0xef   :  { %311 = vadd.xlane.f32.xlu0 %v310_v16  ;;  %v298_v19 = vsel %vm279_vm1, %v269_v25, 0.0  ;;  %v325_v36 = vsel %vm279_vm1, %v278_v34, 0.0  ;;  %v1026_v62 = vand.u32 127, %v586_v55  ;;  %v1032_v4 = vshrl.u32 %v586_v55, 7 }
  0xf0   :  { %287 = vadd.xlane.f32.xlu1 %v286_v15  ;;  %v322_v37 = vsel %vm279_vm1, %v277_v35, 0.0 }
  0xf1   :  { %v1036_v6 = vadd.s32 4294967224, %v1026_v62  ;;  %v1039_v7 = vadd.s32 4294967288, %v1026_v62  ;;  %v1065_v24 = vadd.s32 4294967208, %v1026_v62  ;;  %v1068_v26 = vadd.s32 4294967232, %v1026_v62 }
  0xf2   :  { %v1071_v27 = vadd.s32 4294967280, %v1026_v62  ;;  %v1074_v29 = vadd.s32 4294967216, %v1026_v62  ;;  %v1082_v34 = vadd.s32 4294967264, %v1026_v62 }
  0xf3   :  { %293 = vadd.xlane.f32.xlu0 %v292_v23  ;;  %v1062_v23 = vadd.s32 4294967272, %v1026_v62  ;;  %1478 = vst [vmem:[#allocation3_spill] sm:$0xff] %v1065_v24 }
  0xf4   :  { %296 = vadd.xlane.f32.xlu1 %v295_v22 }
  0xf7   :  { %299 = vadd.xlane.f32.xlu0 %v298_v19  ;;  %v1078_v19 = vadd.s32 4294967256, %v1026_v62 }
  0xf8   :  { %302 = vadd.xlane.f32.xlu1 %v301_v31 }
  0xf9   :  { %1479 = vst [vmem:[#allocation4_spill] sm:$0xff] %v1078_v19 }
  0xfb   :  { %317 = vadd.xlane.f32.xlu0 %v316_v33 }
  0xfc   :  { %320 = vadd.xlane.f32.xlu1 %v319_v32 }
  0xff   :  { %323 = vadd.xlane.f32.xlu0 %v322_v37 }
 0x100   :  { %326 = vadd.xlane.f32.xlu1 %v325_v36 }
 0x170   :  { %v285_v40 = vpop.xlane.xlu0 %284 }
 0x171   :  { %v309_v39 = vpop.xlane.xlu1 %308  ;;  %v1004_v28 = vadd.f32 %v998_v38, %v285_v40 }
 0x172   :  { %v1001_v41 = vadd.f32 %v998_v38, %v309_v39 }
 0x173   :  { %v363_v45 = vmin.f32 %v1004_v28, 20.0  ;;  %vm347_vm6 = vcmp.gt.f32.partialorder %v1004_v28, 20.0 }
 0x174   :  { %v371_v42 = vmin.f32 %v1001_v41, 20.0  ;;  %v282_v44 = vpop.xlane.xlu0 %281  ;;  %vm355_vm5 = vcmp.gt.f32.partialorder %v1001_v41, 20.0 }
 0x175   :  { %v291_v43 = vpop.xlane.xlu1 %290  ;;  %v1009_v46 = vadd.f32 %v998_v38, %v282_v44  ;;  %v380_v50 = vmul.f32 1.442695, %v363_v45  ;;  %v1099_v44 = vadd.s32 4294967248, %v1026_v62 }
 0x176   :  { %v396_v47 = vmul.f32 1.442695, %v371_v42  ;;  %v1013_v51 = vadd.f32 %v998_v38, %v291_v43  ;;  %v1096_v43 = vadd.s32 4294967240, %v1026_v62 }
 0x177   :  { %v362_v48 = vmin.f32 %v1009_v46, 20.0  ;;  %1481 = vst [vmem:[#allocation6_spill] sm:$0xff] %v1099_v44  ;;  %vm346_vm8 = vcmp.gt.f32.partialorder %v1009_v46, 20.0 }
 0x178   :  { %v306_v52 = vpop.xlane.xlu0 %305  ;;  %773 = vpow2.f32 %v396_v47  ;;  %v365_v56 = vmin.f32 %v1013_v51, 20.0  ;;  %1480 = vst [vmem:[#allocation5_spill] sm:$0xff] %v1096_v43  ;;  %vm349_vm9 = vcmp.gt.f32.partialorder %v1013_v51, 20.0 }
 0x179   :  { %v315_v49 = vpop.xlane.xlu1 %314  ;;  %v378_v53 = vmul.f32 1.442695, %v362_v48  ;;  %775 = vpow2.f32 %v380_v50  ;;  %v1020_v58 = vadd.f32 %v998_v38, %v306_v52 }
 0x17a   :  { %v1024_v61 = vadd.f32 %v998_v38, %v315_v49  ;;  %v384_v63 = vmul.f32 1.442695, %v365_v56 }
 0x17b   :  { %777 = vpow2.f32 %v378_v53  ;;  %v370_v0 = vmin.f32 %v1020_v58, 20.0  ;;  %vm354_vm14 = vcmp.gt.f32.partialorder %v1020_v58, 20.0 }
 0x17c   :  { %v312_v60 = vpop.xlane.xlu0 %311  ;;  %v373_v5 = vmin.f32 %v1024_v61, 20.0  ;;  %779 = vpow2.f32 %v384_v63 }
 0x17d   :  { %v288_v54 = vpop.xlane.xlu1 %287  ;;  %v1030_v3 = vadd.f32 %v998_v38, %v312_v60  ;;  %v394_v11 = vmul.f32 1.442695, %v370_v0 }
 0x17e   :  { %v1017_v57 = vadd.f32 %v998_v38, %v288_v54  ;;  %v400_v14 = vmul.f32 1.442695, %v373_v5 }
 0x17f   :  { %v372_v13 = vmin.f32 %v1030_v3, 20.0 }
 0x180   :  { %v364_v59 = vmin.f32 %v1017_v57, 20.0  ;;  %v294_v9 = vpop.xlane.xlu0 %293  ;;  %vm348_vm11 = vcmp.gt.f32.partialorder %v1017_v57, 20.0 }
 0x181   :  { %v297_v1 = vpop.xlane.xlu1 %296  ;;  %v1050_v15 = vadd.f32 %v998_v38, %v294_v9  ;;  %v398_v30 = vmul.f32 1.442695, %v372_v13  ;;  %v1132_v13 = vadd.s32 4294967176, %v1026_v62 }
 0x182   :  { %v382_v2 = vmul.f32 1.442695, %v364_v59  ;;  %v1042_v8 = vadd.f32 %v998_v38, %v297_v1  ;;  %v1044_v10 = vpop.eup %773  ;;  %v1122_v1 = vadd.s32 4294967192, %v1026_v62 }
 0x183   :  { %v1046_v12 = vpop.eup %775  ;;  %v491_v18 = vadd.f32 1.0, %v1044_v10  ;;  %v366_v32 = vmin.f32 %v1050_v15, 20.0  ;;  %v494_v54 = vmul.f32 -0.5, %v1044_v10  ;;  %1484 = vst [vmem:[#allocation9_spill] sm:$0xff] %v1132_v13  ;;  %vm350_vm1 = vcmp.gt.f32.partialorder %v1050_v15, 20.0 }
 0x184   :  { %781 = vpow2.f32 %v382_v2  ;;  %v367_v21 = vmin.f32 %v1042_v8, 20.0  ;;  %v419_v22 = vadd.f32 1.0, %v1046_v12  ;;  %v422_v55 = vmul.f32 -0.5, %v1046_v12  ;;  %v300_v0 = vpop.xlane.xlu0 %299  ;;  %1482 = vst [vmem:[#allocation7_spill] sm:$0xff] %v1122_v1 }
 0x185   :  { %v1052_v16 = vpop.eup %777  ;;  %783 = vpow2.f32 %v394_v11  ;;  %v303_v25 = vpop.xlane.xlu1 %302  ;;  %v386_v42 = vmul.f32 1.442695, %v366_v32  ;;  %v1129_v11 = vadd.s32 4294967200, %v1026_v62 }
 0x186   :  { %v410_v31 = vadd.f32 1.0, %v1052_v16  ;;  %785 = vpow2.f32 %v400_v14  ;;  %v388_v33 = vmul.f32 1.442695, %v367_v21  ;;  %v1085_v35 = vadd.f32 %v998_v38, %v303_v25  ;;  %v1093_v40 = vpop.eup %779 }
 0x187   :  { %787 = vlog2.f32 %v491_v18  ;;  %v437_v56 = vadd.f32 1.0, %v1093_v40  ;;  %v440_v5 = vmul.f32 -0.5, %v1093_v40  ;;  %1483 = vst [vmem:[#allocation8_spill] sm:$0xff] %v1129_v11  ;;  %v497_v14 = vand.u32 2147483647, %v1044_v10 }
 0x188   :  { %789 = vlog2.f32 %v419_v22  ;;  %v369_v53 = vmin.f32 %v1085_v35, 20.0  ;;  %v413_v18 = vmul.f32 -0.5, %v1052_v16  ;;  %v1137_v21 = vadd.s32 4294967184, %v1026_v62 }
 0x189   :  { %791 = vpow2.f32 %v398_v30  ;;  %v495_v25 = vadd.f32 1.0, %v494_v54  ;;  %v423_v30 = vadd.f32 1.0, %v422_v55  ;;  %v321_v39 = vpop.xlane.xlu1 %320  ;;  %v441_v59 = vadd.f32 1.0, %v440_v5 }
 0x18a   :  { %793 = vlog2.f32 %v410_v31  ;;  %v392_v60 = vmul.f32 1.442695, %v369_v53  ;;  %1485 = vst [vmem:[#allocation10_spill] sm:$0xff] %v1137_v21  ;;  %v425_v31 = vand.u32 2147483647, %v1046_v12  ;;  %v1145_v53 = vadd.f32 %v998_v38, %v300_v0 }
 0x18b   :  { %795 = vpow2.f32 %v388_v33  ;;  %v416_v33 = vand.u32 2147483647, %v1052_v16  ;;  %vm1155_vm2 = vcmp.lt.f32.partialorder %v497_v14, 0.0004427343  ;;  %v414_v0 = vadd.f32 1.0, %v413_v18 }
 0x18c   :  { %797 = vpow2.f32 %v386_v42  ;;  %v1163_v45 = vmul.f32 %v1044_v10, %v495_v25  ;;  %v1166_v54 = vmul.f32 %v1046_v12, %v423_v30  ;;  %vm1168_vm3 = vcmp.lt.f32.partialorder %v425_v31, 0.0004427343 }
 0x18d   :  { %799 = vpow2.f32 %v392_v60  ;;  %v318_v60 = vpop.xlane.xlu0 %317  ;;  %v443_v14 = vand.u32 2147483647, %v1093_v40  ;;  %vm1175_vm4 = vcmp.lt.f32.partialorder %v416_v33, 0.0004427343  ;;  %v368_v5 = vmin.f32 %v1145_v53, 20.0  ;;  %v327_v36 = vpop.xlane.xlu1 %326 }
 0x18e   :  { %v1107_v49 = vpop.eup %781  ;;  %801 = vlog2.f32 %v437_v56  ;;  %v1181_v10 = vadd.f32 %v998_v38, %v321_v39  ;;  %v1186_v25 = vmul.f32 %v1093_v40, %v441_v59  ;;  %v1191_v33 = vadd.f32 %v998_v38, %v318_v60 }
 0x18f   :  { %v1124_v2 = vpop.eup %783  ;;  %v428_v9 = vadd.f32 1.0, %v1107_v49  ;;  %v431_v47 = vmul.f32 -0.5, %v1107_v49  ;;  %vm1198_vm7 = vcmp.lt.f32.partialorder %v443_v14, 0.0004427343  ;;  %v390_v37 = vmul.f32 1.442695, %v368_v5 }
 0x190   :  { %v1139_v22 = vpop.eup %785  ;;  %v482_v42 = vadd.f32 1.0, %v1124_v2  ;;  %v485_v17 = vmul.f32 -0.5, %v1124_v2  ;;  %v374_v14 = vmin.f32 %v1191_v33, 20.0  ;;  %v1212_v13 = vadd.f32 %v998_v38, %v327_v36 }
 0x191   :  { %v788_v32 = vpop.eup %787  ;;  %803 = vlog2.f32 %v428_v9  ;;  %v509_v48 = vadd.f32 1.0, %v1139_v22  ;;  %v512_v30 = vmul.f32 -0.5, %v1139_v22  ;;  %v515_v39 = vand.u32 2147483647, %v1139_v22  ;;  %v324_v5 = vpop.xlane.xlu0 %323 }
 0x192   :  { %v790_v63 = vpop.eup %789  ;;  %805 = vlog2.f32 %v482_v42  ;;  %v415_v42 = vmul.f32 %v1052_v16, %v414_v0  ;;  %v493_v20 = vmul.f32 0.6931472, %v788_v32  ;;  %v375_v32 = vmin.f32 %v1181_v10, 20.0 }
 0x193   :  { %v1153_v56 = vpop.eup %791  ;;  %807 = vlog2.f32 %v509_v48  ;;  %v421_v40 = vmul.f32 0.6931472, %v790_v63  ;;  %v513_v1 = vadd.f32 1.0, %v512_v30  ;;  %v488_v11 = vand.u32 2147483647, %v1124_v2 }
 0x194   :  { %v794_v9 = vpop.eup %793  ;;  %v500_v31 = vadd.f32 1.0, %v1153_v56  ;;  %v432_v36 = vadd.f32 1.0, %v431_v47  ;;  %v402_v19 = vmul.f32 1.442695, %v374_v14  ;;  %v377_v50 = vmin.f32 %v1212_v13, 20.0 }
 0x195   :  { %v1173_v18 = vpop.eup %795  ;;  %v412_v0 = vmul.f32 0.6931472, %v794_v9  ;;  %v434_v9 = vand.u32 2147483647, %v1107_v49  ;;  %v427_v44 = vsel %vm1168_vm3, %v1166_v54, %v421_v40  ;;  %vm1230_vm12 = vcmp.lt.f32.partialorder %v515_v39, 0.0004427343 }
 0x196   :  { %v1183_v12 = vpop.eup %797  ;;  %v455_v60 = vadd.f32 1.0, %v1173_v18  ;;  %809 = vlog2.f32 %v500_v31  ;;  %v499_v31 = vsel %vm1155_vm2, %v1163_v45, %v493_v20  ;;  %v1228_v20 = vadd.f32 %v998_v38, %v324_v5 }
 0x197   :  { %v446_v16 = vadd.f32 1.0, %v1183_v12  ;;  %v1205_v48 = vpop.eup %799  ;;  %v418_v30 = vsel %vm1175_vm4, %v415_v42, %v412_v0  ;;  %vm1234_vm13 = vcmp.lt.f32.partialorder %v434_v9, 0.0004427343  ;;  %v408_v38 = vmul.f32 1.442695, %v377_v50 }
 0x198   :  { %v802_v21 = vpop.eup %801  ;;  %v473_v63 = vadd.f32 1.0, %v1205_v48  ;;  %v376_v55 = vmin.f32 %v1228_v20, 20.0  ;;  %v554_v39 = vsel %vm346_vm8, %v1009_v46, %v418_v30  ;;  %vm1255_vm15 = vcmp.lt.f32.partialorder %v488_v11, 0.0004427343 }
 0x199   :  { %811 = vlog2.f32 %v446_v16  ;;  %v439_v43 = vmul.f32 0.6931472, %v802_v21  ;;  %v404_v16 = vmul.f32 1.442695, %v375_v32  ;;  %v486_v21 = vadd.f32 1.0, %v485_v17 }
 0x19a   :  { %813 = vlog2.f32 %v455_v60  ;;  %v555_v17 = vsel %vm347_vm6, %v1004_v28, %v427_v44  ;;  %v406_v60 = vmul.f32 1.442695, %v376_v55  ;;  %v1501_v11 = vsub.s32 %v1036_v6, %v1032_v4 }
 0x19b   :  { %v804_v24 = vpop.eup %803  ;;  %815 = vpow2.f32 %v390_v37  ;;  %v563_v37 = vsel %vm355_vm5, %v1001_v41, %v499_v31  ;;  %v433_v41 = vmul.f32 %v1107_v49, %v432_v36  ;;  %v487_v0 = vmul.f32 %v1124_v2, %v486_v21 }
 0x19c   :  { %817 = vlog2.f32 %v473_v63  ;;  %v806_v45 = vpop.eup %805  ;;  %v430_v54 = vmul.f32 0.6931472, %v804_v24  ;;  %v445_v24 = vsel %vm1198_vm7, %v1186_v25, %v439_v43  ;;  %v503_v43 = vmul.f32 -0.5, %v1153_v56 }
 0x19d   :  { %819 = vpow2.f32 %v404_v16  ;;  %v808_v42 = vpop.eup %807  ;;  %v484_v40 = vmul.f32 0.6931472, %v806_v45  ;;  %v557_v46 = vsel %vm349_vm9, %v1013_v51, %v445_v24  ;;  %v1500_v49 = vsub.s32 %v1026_v62, %v1032_v4 }
 0x19e   :  { %821 = vpow2.f32 %v402_v19  ;;  %v449_v19 = vmul.f32 -0.5, %v1183_v12  ;;  %v436_v28 = vsel %vm1234_vm13, %v433_v41, %v430_v54  ;;  %v1268_v59 = vmul.f32 0.6931472, %v808_v42 }
 0x19f   :  { %823 = vpow2.f32 %v408_v38  ;;  %v591_v25 = vrot.slane %v554_v39, %v1500_v49  ;;  %v1273_v63 = vrot.slane %v563_v37, %v1501_v11  ;;  %v1502_v14 = vsub.s32 %v1039_v7, %v1032_v4 }
 0x1a0   :  { %v810_v44 = vpop.eup %809  ;;  %825 = vpow2.f32 %v406_v60  ;;  %v1279_v51 = vmul.f32 %v1139_v22, %v513_v1  ;;  %v506_v62 = vand.u32 2147483647, %v1153_v56  ;;  %v490_v31 = vsel %vm1255_vm15, %v487_v0, %v484_v40 }
 0x1a1   :  { %v596_v9 = vrot.slane %v555_v17, %v1502_v14  ;;  %v556_v36 = vsel %vm348_vm11, %v1017_v57, %v436_v28  ;;  %v458_v6 = vmul.f32 -0.5, %v1173_v18  ;;  %v450_v30 = vadd.f32 1.0, %v449_v19 }
 0x1a2   :  { %v1503_v1 = vsub.s32 %v1062_v23, %v1032_v4  ;;  %v504_v16 = vadd.f32 1.0, %v503_v43  ;;  %v452_v50 = vand.u32 2147483647, %v1183_v12  ;;  %v476_v45 = vmul.f32 -0.5, %v1205_v48  ;;  %v1520_v43 = vld [vmem:[#allocation6_spill] sm:$0xff] }
 0x1a3   :  { %v812_v2 = vpop.eup %811  ;;  %v598_v57 = vsel %vm597_vm10, %v596_v9, %v591_v25  ;;  %v517_v54 = vsel %vm1230_vm12, %v1279_v51, %v1268_v59  ;;  %vm356_vm2 = vcmp.gt.f32.partialorder %v1030_v3, 20.0  ;;  %vm357_vm3 = vcmp.gt.f32.partialorder %v1024_v61, 20.0 }
 0x1a4   :  { %v814_v5 = vpop.eup %813  ;;  %v1294_v22 = vrot.slane %v557_v46, %v1503_v1  ;;  %v448_v52 = vmul.f32 0.6931472, %v812_v2  ;;  %v562_v38 = vsel %vm354_vm14, %v1020_v58, %v490_v31  ;;  %v1504_v55 = vsub.s32 %v1071_v27, %v1032_v4 }
 0x1a5   :  { %v1289_v7 = vpop.eup %815  ;;  %vm1314_vm4 = vcmp.lt.f32.partialorder %v506_v62, 0.0004427343  ;;  %v461_v17 = vand.u32 2147483647, %v1173_v18  ;;  %vm611_vm5 = vcmask 261312   ;;  %vm351_vm6 = vcmp.gt.f32.partialorder %v1042_v8, 20.0 }
 0x1a6   :  { %v818_v21 = vpop.eup %817  ;;  %v464_v23 = vadd.f32 1.0, %v1289_v7  ;;  %v603_v42 = vrot.slane %v556_v36, %v1504_v55  ;;  %v502_v39 = vmul.f32 0.6931472, %v810_v44  ;;  %v459_v41 = vadd.f32 1.0, %v458_v6 }
 0x1a7   :  { %v1305_v37 = vpop.eup %819  ;;  %v451_v40 = vmul.f32 %v1183_v12, %v450_v30  ;;  %v505_v58 = vmul.f32 %v1153_v56, %v504_v16  ;;  %vm618_vm7 = vcmask 326912   ;;  %vm1324_vm8 = vcmp.lt.f32.partialorder %v452_v50, 0.0004427343 }
 0x1a8   :  { %v1319_v24 = vpop.eup %821  ;;  %827 = vlog2.f32 %v464_v23  ;;  %vm353_vm9 = vcmp.gt.f32.partialorder %v1085_v35, 20.0  ;;  %v477_v19 = vadd.f32 1.0, %v476_v45  ;;  %v527_v60 = vadd.f32 1.0, %v1305_v37 }
 0x1a9   :  { %v1330_v0 = vpop.eup %823  ;;  %v457_v32 = vmul.f32 0.6931472, %v814_v5  ;;  %v454_v28 = vsel %vm1324_vm8, %v451_v40, %v448_v52  ;;  %v479_v12 = vand.u32 2147483647, %v1205_v48  ;;  %v518_v56 = vadd.f32 1.0, %v1319_v24 }
 0x1aa   :  { %vm1336_vm10 = vcmp.lt.f32.partialorder %v461_v17, 0.0004427343  ;;  %v475_v44 = vmul.f32 0.6931472, %v818_v21  ;;  %v467_v46 = vmul.f32 -0.5, %v1289_v7  ;;  %829 = vlog2.f32 %v527_v60  ;;  %v1341_v49 = vpop.eup %825 }
 0x1ab   :  { %v508_v25 = vsel %vm1314_vm4, %v505_v58, %v502_v39  ;;  %v460_v59 = vmul.f32 %v1173_v18, %v459_v41  ;;  %831 = vlog2.f32 %v518_v56  ;;  %v545_v2 = vadd.f32 1.0, %v1330_v0  ;;  %v1518_v41 = vld [vmem:[#allocation5_spill] sm:$0xff] }
 0x1ac   :  { %v605_v11 = vsel %vm604_vm0, %v603_v42, %v598_v57  ;;  %v558_v14 = vsel %vm350_vm1, %v1050_v15, %v454_v28  ;;  %v478_v9 = vmul.f32 %v1205_v48, %v477_v19  ;;  %vm625_vm11 = vcmask 392512   ;;  %v1516_v42 = vld [vmem:[#allocation4_spill] sm:$0xff] }
 0x1ad   :  { %vm352_vm12 = vcmp.gt.f32.partialorder %v1145_v53, 20.0  ;;  %v530_v51 = vmul.f32 -0.5, %v1305_v37  ;;  %v463_v62 = vsel %vm1336_vm10, %v460_v59, %v457_v32  ;;  %vm1356_vm13 = vcmp.lt.f32.partialorder %v479_v12, 0.0004427343 }
 0x1ae   :  { %vm632_vm14 = vcmask 458112   ;;  %833 = vlog2.f32 %v545_v2  ;;  %v536_v5 = vadd.f32 1.0, %v1341_v49  ;;  %v564_v15 = vsel %vm356_vm2, %v1030_v3, %v508_v25 }
 0x1af   :  { %v481_v48 = vsel %vm1356_vm13, %v478_v9, %v475_v44  ;;  %vm639_vm15 = vcmask 523712   ;;  %v468_v31 = vadd.f32 1.0, %v467_v46  ;;  %v521_v36 = vmul.f32 -0.5, %v1319_v24 }
 0x1b0   :  { %v1370_v6 = vsel %vm357_vm3, %v1024_v61, %v517_v54  ;;  %v1513_v30 = vsub.s32 %v1082_v34, %v1032_v4  ;;  %vm646_vm0 = vcmask 589312   ;;  %v470_v16 = vand.u32 2147483647, %v1289_v7 }
 0x1b1   :  { %835 = vlog2.f32 %v536_v5  ;;  %v1514_v3 = vsub.s32 %v1068_v26, %v1032_v4  ;;  %v559_v45 = vsel %vm351_vm6, %v1042_v8, %v463_v62  ;;  %v531_v21 = vadd.f32 1.0, %v530_v51 }
 0x1b2   :  { %v617_v1 = vrot.slane %v558_v14, %v1513_v30  ;;  %vm653_vm1 = vcmask 654912   ;;  %vm358_vm2 = vcmp.gt.f32.partialorder %v1191_v33, 20.0  ;;  %v548_v61 = vmul.f32 -0.5, %v1330_v0  ;;  %v828_v34 = vpop.eup %827 }
 0x1b3   :  { %v645_v50 = vrot.slane %v562_v38, %v1514_v3  ;;  %v1515_v57 = vsub.s32 %v1074_v29, %v1032_v4  ;;  %v612_v52 = vsel %vm611_vm5, %v1294_v22, %v605_v11  ;;  %v561_v26 = vsel %vm353_vm9, %v1085_v35, %v481_v48 }
 0x1b4   :  { %vm359_vm3 = vcmp.gt.f32.partialorder %v1181_v10, 20.0  ;;  %vm660_vm4 = vcmask 720512   ;;  %v539_v8 = vmul.f32 -0.5, %v1341_v49  ;;  %v466_v23 = vmul.f32 0.6931472, %v828_v34  ;;  %v830_v39 = vpop.eup %829  ;;  %v1528_v34 = vld [vmem:[#allocation7_spill] sm:$0xff] }
 0x1b5   :  { %v659_v54 = vrot.slane %v564_v15, %v1515_v57  ;;  %v469_v38 = vmul.f32 %v1289_v7, %v468_v31  ;;  %v533_v55 = vand.u32 2147483647, %v1305_v37  ;;  %vm667_vm6 = vcmask 786112   ;;  %v832_v60 = vpop.eup %831 }
 0x1b6   :  { %v522_v29 = vadd.f32 1.0, %v521_v36  ;;  %vm361_vm8 = vcmp.gt.f32.partialorder %v1212_v13, 20.0  ;;  %v1517_v22 = vsub.s32 %v1516_v42, %v1032_v4  ;;  %v619_v35 = vsel %vm618_vm7, %v617_v1, %v612_v52  ;;  %v1530_v52 = vld [vmem:[#allocation9_spill] sm:$0xff] }
 0x1b7   :  { %vm471_vm5 = vcmp.lt.f32.partialorder %v470_v16, 0.0004427343  ;;  %vm674_vm9 = vcmask 851712   ;;  %v524_v17 = vand.u32 2147483647, %v1319_v24  ;;  %v1519_v7 = vsub.s32 %v1518_v41, %v1032_v4  ;;  %v1524_v16 = vld [vmem:[#allocation3_spill] sm:$0xff] }
 0x1b8   :  { %v624_v47 = vrot.slane %v559_v45, %v1517_v22  ;;  %v472_v58 = vsel %vm471_vm5, %v469_v38, %v466_v23  ;;  %v532_v27 = vmul.f32 %v1305_v37, %v531_v21  ;;  %v549_v19 = vadd.f32 1.0, %v548_v61  ;;  %v834_v2 = vpop.eup %833  ;;  %v1532_v23 = vld [vmem:[#allocation10_spill] sm:$0xff] }
 0x1b9   :  { %v638_v40 = vrot.slane %v561_v26, %v1519_v7  ;;  %vm681_vm10 = vcmask 917312   ;;  %v560_v32 = vsel %vm352_vm12, %v1145_v53, %v472_v58  ;;  %v529_v28 = vmul.f32 0.6931472, %v830_v39 }
 0x1ba   :  { %v551_v12 = vand.u32 2147483647, %v1330_v0  ;;  %vm688_vm7 = vcmask 982912   ;;  %v540_v56 = vadd.f32 1.0, %v539_v8  ;;  %v1521_v44 = vsub.s32 %v1520_v43, %v1032_v4 }
 0x1bb   :  { %vm1413_vm13 = vcmp.lt.f32.partialorder %v533_v55, 0.0004427343  ;;  %v520_v37 = vmul.f32 0.6931472, %v832_v60  ;;  %v523_v59 = vmul.f32 %v1319_v24, %v522_v29  ;;  %v626_v11 = vsel %vm625_vm11, %v624_v47, %v619_v35  ;;  %v836_v5 = vpop.eup %835 }
 0x1bc   :  { %v631_v46 = vrot.slane %v560_v32, %v1521_v44  ;;  %v535_v53 = vsel %vm1413_vm13, %v532_v27, %v529_v28  ;;  %vm525_vm12 = vcmp.lt.f32.partialorder %v524_v17, 0.0004427343  ;;  %v542_v14 = vand.u32 2147483647, %v1341_v49 }
 0x1bd   :  { %v526_v51 = vsel %vm525_vm12, %v523_v59, %v520_v37  ;;  %v547_v62 = vmul.f32 0.6931472, %v834_v2  ;;  %v550_v18 = vmul.f32 %v1330_v0, %v549_v19  ;;  %vm552_vm11 = vcmp.lt.f32.partialorder %v551_v12, 0.0004427343 }
 0x1be   :  { %v633_v9 = vsel %vm632_vm14, %v631_v46, %v626_v11  ;;  %v566_v24 = vsel %vm358_vm2, %v1191_v33, %v526_v51  ;;  %v541_v48 = vmul.f32 %v1341_v49, %v540_v56  ;;  %v567_v36 = vsel %vm359_vm3, %v1181_v10, %v535_v53 }
 0x1bf   :  { %v640_v15 = vsel %vm639_vm15, %v638_v40, %v633_v9  ;;  %v553_v30 = vsel %vm552_vm11, %v550_v18, %v547_v62  ;;  %v538_v1 = vmul.f32 0.6931472, %v836_v5  ;;  %v1525_v0 = vsub.s32 %v1524_v16, %v1032_v4 }
 0x1c0   :  { %v647_v31 = vsel %vm646_vm0, %v645_v50, %v640_v15  ;;  %v569_v33 = vsel %vm361_vm8, %v1212_v13, %v553_v30  ;;  %vm543_vm14 = vcmp.lt.f32.partialorder %v542_v14, 0.0004427343  ;;  %v1526_v50 = vld [vmem:[#allocation8_spill] sm:$0xff]  ;;  %vm360_vm15 = vcmp.gt.f32.partialorder %v1228_v20, 20.0 }
 0x1c1   :  { %v666_v3 = vrot.slane %v1370_v6, %v1525_v0  ;;  %v654_v45 = vsel %vm653_vm1, %v1273_v63, %v647_v31  ;;  %v1527_v10 = vsub.s32 %v1526_v50, %v1032_v4  ;;  %v544_v61 = vsel %vm543_vm14, %v541_v48, %v538_v1 }
 0x1c2   :  { %v661_v49 = vsel %vm660_vm4, %v659_v54, %v654_v45  ;;  %v1529_v6 = vsub.s32 %v1528_v34, %v1032_v4  ;;  %v1531_v26 = vsub.s32 %v1530_v52, %v1032_v4  ;;  %v568_v8 = vsel %vm360_vm15, %v1228_v20, %v544_v61 }
 0x1c3   :  { %v673_v21 = vrot.slane %v566_v24, %v1527_v10  ;;  %v668_v63 = vsel %vm667_vm6, %v666_v3, %v661_v49  ;;  %vm695_vm0 = vcmask 1048512   ;;  %v1533_v38 = vsub.s32 %v1532_v23, %v1032_v4 }
 0x1c4   :  { %v680_v57 = vrot.slane %v567_v36, %v1529_v6  ;;  %v694_v13 = vrot.slane %v569_v33, %v1531_v26 }
 0x1c5   :  { %v675_v54 = vsel %vm674_vm9, %v673_v21, %v668_v63  ;;  %v687_v55 = vrot.slane %v568_v8, %v1533_v38 }
 0x1c6   :  { %v682_v29 = vsel %vm681_vm10, %v680_v57, %v675_v54 }
 0x1c7   :  { %v689_v42 = vsel %vm688_vm7, %v687_v55, %v682_v29 }
 0x1c8   :  { %v696_v22 = vsel %vm695_vm0, %v694_v13, %v689_v42 }
 0x1c9   :  { %698 = vst [vmem:[%s1469_s5] sm:$0x1] %v696_v22 }

</bundles_post_ra>
